<compile_context>
chip_gen: v5e
topology: v5e:2x2
jax: 0.10.0
libtpu: 0.0.40
codegen_flags: <defaults>
</compile_context>

<pallas_src>
import functools

import jax
import jax.numpy as jnp
from jax.experimental import pallas as pl
from jax.experimental.pallas import tpu as pltpu


def _round_up(x, m):
    return ((x + m - 1) // m) * m


def _cdiv(a, b):
    return (a + b - 1) // b


# ----------------------------------------------------------------------------
# Kernel 1: tiled sweep over the entity table for  sum(max(||E_i|| - 1, 0))
# ----------------------------------------------------------------------------
def _ent_reg_kernel(w_ref, out_ref, acc_ref, *, n_rows):
    i = pl.program_id(0)

    @pl.when(i == 0)
    def _():
        acc_ref[0] = 0.0

    w = w_ref[...]                                        # [tile, D]  (VMEM)
    ss = jnp.sum(w * w, axis=1, keepdims=True)            # VALU mul + XLU reduce
    reg = jnp.maximum(jnp.sqrt(ss) - 1.0, 0.0)            # EUP sqrt on [tile, 1]

    # Mask the ragged last tile (rows >= n_rows read unspecified VMEM data).
    tile = w_ref.shape[0]
    row_ids = jax.lax.broadcasted_iota(jnp.int32, (tile, 1), 0) + i * tile
    reg = jnp.where(row_ids < n_rows, reg, 0.0)           # select: NaN-safe

    acc_ref[0] = acc_ref[0] + jnp.sum(reg)

    @pl.when(i == pl.num_programs(0) - 1)
    def _():
        out_ref[0, 0] = acc_ref[0]


# ----------------------------------------------------------------------------
# Kernel 2: batched margin-ranking term, TB triples per grid step
#   per triple i:  max(margin + gold_i - corrupt_i, 0) + l2reg * gold_i
# ----------------------------------------------------------------------------
def _batch_loss_kernel(gh_ref, gr_ref, gt_ref, bh_ref, br_ref, bt_ref,
                       out_ref, acc_ref, *, margin, l2reg, n_rows):
    i = pl.program_id(0)

    @pl.when(i == 0)
    def _():
        acc_ref[0] = 0.0

    gd = gh_ref[...] + gr_ref[...] - gt_ref[...]                      # [TB, D]
    gold = jnp.sqrt(jnp.sum(gd * gd, axis=1, keepdims=True))          # [TB, 1]

    bd = bh_ref[...] + br_ref[...] - bt_ref[...]                      # [TB, D]
    corrupt = jnp.sqrt(jnp.sum(bd * bd, axis=1, keepdims=True))       # [TB, 1]

    contrib = jnp.maximum(margin + gold - corrupt, 0.0) + l2reg * gold

    # Mask the ragged last tile (rows >= n_rows are out-of-bounds reads).
    tb = gh_ref.shape[0]
    row_ids = jax.lax.broadcasted_iota(jnp.int32, (tb, 1), 0) + i * tb
    contrib = jnp.where(row_ids < n_rows, contrib, 0.0)

    acc_ref[0] = acc_ref[0] + jnp.sum(contrib)

    @pl.when(i == pl.num_programs(0) - 1)
    def _():
        out_ref[0, 0] = acc_ref[0]


def transe_forward(ents_w, rels_w, heads, rels, tails,
                   heads_bad, rels_bad, tails_bad,
                   *, margin=1.0, l2reg=0.1, ent_tile=8192, batch_tile=512):
    """Replicates TransE.forward(...): returns the scalar training loss."""
    nEnts, dim = ents_w.shape
    ents_w = ents_w.astype(jnp.float32)
    rels_w = rels_w.astype(jnp.float32)

    # --- Kernel 1: entity-table regularizer, large tiles, in-kernel edge mask
    # Cap double-buffered input at ~12 MiB so we stay under v5e's 16 MiB
    # scoped-VMEM default and well under v7x's 32 MiB scoped / 64 MiB VMEM.
    vmem_budget = 12 * 1024 * 1024
    max_tile = max(8, (vmem_budget // (2 * dim * 4)) // 8 * 8)
    tile = min(_round_up(int(ent_tile), 8), max_tile, _round_up(nEnts, 8))
    n_tiles = _cdiv(nEnts, tile)

    reg_sum = pl.pallas_call(
        functools.partial(_ent_reg_kernel, n_rows=nEnts),
        out_shape=jax.ShapeDtypeStruct((1, 1), jnp.float32),
        grid=(n_tiles,),
        in_specs=[pl.BlockSpec((tile, dim), lambda i: (i, 0))],
        out_specs=pl.BlockSpec(memory_space=pltpu.MemorySpace.SMEM),
        scratch_shapes=[pltpu.SMEM((1,), jnp.float32)],
        compiler_params=pltpu.CompilerParams(
            dimension_semantics=("arbitrary",)),
    )(ents_w)

    # --- Kernel 2: batch margin-ranking term, TB triples per step -----------
    B = int(heads.shape[0])
    idx = [jnp.asarray(a, dtype=jnp.int32)
           for a in (heads, rels, tails, heads_bad, rels_bad, tails_bad)]

    # Row gathers once in the wrapper (XLA gather); kernel streams [B, D] slabs.
    gh = jnp.take(ents_w, idx[0], axis=0)
    gr = jnp.take(rels_w, idx[1], axis=0)
    gt = jnp.take(ents_w, idx[2], axis=0)
    bh = jnp.take(ents_w, idx[3], axis=0)
    br = jnp.take(rels_w, idx[4], axis=0)
    bt = jnp.take(ents_w, idx[5], axis=0)

    tb = min(_round_up(int(batch_tile), 8), _round_up(B, 8))
    n_btiles = _cdiv(B, tb)

    batch_kernel = functools.partial(
        _batch_loss_kernel, margin=float(margin), l2reg=float(l2reg), n_rows=B)

    row_spec = pl.BlockSpec((tb, dim), lambda i: (i, 0))
    batch_sum = pl.pallas_call(
        batch_kernel,
        out_shape=jax.ShapeDtypeStruct((1, 1), jnp.float32),
        grid=(n_btiles,),
        in_specs=[row_spec] * 6,
        out_specs=pl.BlockSpec(memory_space=pltpu.MemorySpace.SMEM),
        scratch_shapes=[pltpu.SMEM((1,), jnp.float32)],
        compiler_params=pltpu.CompilerParams(
            dimension_semantics=("arbitrary",)),
    )(gh, gr, gt, bh, br, bt)

    return batch_sum[0, 0] + float(l2reg) * reg_sum[0, 0]


def _reference_loss(ents_w, rels_w, heads, rels, tails,
                    heads_bad, rels_bad, tails_bad, margin, l2reg):
    """Pure-JAX reference mirroring the PyTorch forward()/loss()."""
    def score(h, r, t):
        v = ents_w[h] + rels_w[r] - ents_w[t]
        return jnp.sqrt(jnp.sum(v * v, axis=1))

    gold = score(heads, rels, tails)
    corrupt = score(heads_bad, rels_bad, tails_bad)
    rank_loss = jnp.sum(jnp.maximum(margin + gold - corrupt, 0.0))
    reg = l2reg * jnp.sum(jnp.maximum(
        jnp.sqrt(jnp.sum(ents_w * ents_w, axis=1)) - 1.0, 0.0))
    reg = reg + l2reg * jnp.sum(gold)
    return rank_loss + reg


if __name__ == "__main__":
    # Small synthetic config (module defaults: dim=100, norm=2, margin=1, l2reg=0.1)
    nEnts, nRels, dim, batch = 64, 16, 32, 8
    margin, l2reg = 1.0, 0.1

    key = jax.random.PRNGKey(0)
    k_ents, k_rels, k_idx = jax.random.split(key, 3)

    # nn.Embedding default init ~ N(0, 1); padding_idx=0 row is zeroed.
    ents_w = jax.random.normal(k_ents, (nEnts, dim), dtype=jnp.float32)
    ents_w = ents_w.at[0].set(0.0)
    rels_w = jax.random.normal(k_rels, (nRels, dim), dtype=jnp.float32)
    rels_w = rels_w.at[0].set(0.0)

    ks = jax.random.split(k_idx, 6)
    heads = jax.random.randint(ks[0], (batch,), 0, nEnts, dtype=jnp.int32)
    rels = jax.random.randint(ks[1], (batch,), 0, nRels, dtype=jnp.int32)
    tails = jax.random.randint(ks[2], (batch,), 0, nEnts, dtype=jnp.int32)
    heads_bad = jax.random.randint(ks[3], (batch,), 0, nEnts, dtype=jnp.int32)
    rels_bad = rels  # corrupted triples keep the relation (standard TransE sampling)
    tails_bad = jax.random.randint(ks[4], (batch,), 0, nEnts, dtype=jnp.int32)
    # `sources` / `sources_bad` are unused by the forward compute (bookkeeping only).

    loss = transe_forward(ents_w, rels_w, heads, rels, tails,
                          heads_bad, rels_bad, tails_bad,
                          margin=margin, l2reg=l2reg)
    loss = jax.block_until_ready(loss)

    ref = _reference_loss(ents_w, rels_w, heads, rels, tails,
                          heads_bad, rels_bad, tails_bad, margin, l2reg)
    assert jnp.allclose(loss, ref, rtol=1e-5, atol=5e-3), (loss, ref)

    print("KERNEL_OK")
</pallas_src>

<mosaic_0001>
module attributes {stable_mosaic.version = 11 : i64} {
  func.func @_ent_reg_kernel(%arg0: i32, %arg1: memref<64x32xf32, #tpu.memory_space<vmem>>, %arg2: memref<1x1xf32, #tpu.memory_space<smem>>, %arg3: memref<1xf32, #tpu.memory_space<smem>>) attributes {dimension_semantics = [#tpu.dimension_semantics<arbitrary>], iteration_bounds = array<i64: 1>, scalar_prefetch = 0 : i64, scratch_operands = 1 : i64, tpu.core_type = #tpu.core_type<tc>, window_params = [{transform_indices = @transform_0, window_bounds = array<i64: 64, 32>}, {transform_indices = @transform_1, window_bounds = array<i64: 1, 1>}]} {
    %c0_i32 = arith.constant 0 : i32
    %0 = arith.cmpi eq, %arg0, %c0_i32 : i32
    %1 = arith.extui %0 : i1 to i32
    %c0_i32_0 = arith.constant 0 : i32
    %2 = arith.cmpi ne, %1, %c0_i32_0 : i32
    scf.if %2 {
      %cst_11 = arith.constant 0.000000e+00 : f32
      %c0_12 = arith.constant 0 : index
      %30 = memref.load %arg3[%c0_12] : memref<1xf32, #tpu.memory_space<smem>>
      memref.store %cst_11, %arg3[%c0_12] : memref<1xf32, #tpu.memory_space<smem>>
    } else {
    }
    %c0 = arith.constant 0 : index
    %c0_1 = arith.constant 0 : index
    %3 = vector.load %arg1[%c0, %c0_1] : memref<64x32xf32, #tpu.memory_space<vmem>>, vector<64x32xf32>
    %4 = arith.mulf %3, %3 : vector<64x32xf32>
    %cst = arith.constant dense<0.000000e+00> : vector<64xf32>
    %5 = vector.multi_reduction <add>, %4, %cst [1] : vector<64x32xf32> to vector<64xf32>
    %6 = vector.shape_cast %5 : vector<64xf32> to vector<64x1xf32>
    %7 = math.sqrt %6 : vector<64x1xf32>
    %cst_2 = arith.constant 1.000000e+00 : f32
    %8 = vector.broadcast %cst_2 : f32 to vector<64x1xf32>
    %9 = arith.subf %7, %8 : vector<64x1xf32>
    %cst_3 = arith.constant 0.000000e+00 : f32
    %10 = vector.broadcast %cst_3 : f32 to vector<64x1xf32>
    %11 = arith.maximumf %9, %10 : vector<64x1xf32>
    %12 = tpu.iota {dimensions = array<i32: 0>} : vector<64x1xi32>
    %c64_i32 = arith.constant 64 : i32
    %13 = arith.muli %arg0, %c64_i32 : i32
    %14 = vector.broadcast %13 : i32 to vector<64x1xi32>
    %15 = arith.addi %12, %14 : vector<64x1xi32>
    %c64_i32_4 = arith.constant 64 : i32
    %16 = vector.broadcast %c64_i32_4 : i32 to vector<64x1xi32>
    %17 = arith.cmpi slt, %15, %16 : vector<64x1xi32>
    %cst_5 = arith.constant 0.000000e+00 : f32
    %18 = vector.broadcast %cst_5 : f32 to vector<64x1xf32>
    %19 = arith.select %17, %11, %18 : vector<64x1xi1>, vector<64x1xf32>
    %c0_6 = arith.constant 0 : index
    %20 = memref.load %arg3[%c0_6] : memref<1xf32, #tpu.memory_space<smem>>
    %21 = vector.shape_cast %19 : vector<64x1xf32> to vector<1x64x1xf32>
    %cst_7 = arith.constant dense<0.000000e+00> : vector<1xf32>
    %22 = vector.multi_reduction <add>, %21, %cst_7 [1, 2] : vector<1x64x1xf32> to vector<1xf32>
    %23 = vector.shape_cast %22 : vector<1xf32> to vector<1x1x1xf32>
    %24 = vector.extract %23[0, 0, 0] : f32 from vector<1x1x1xf32>
    %25 = arith.addf %20, %24 : f32
    %c0_8 = arith.constant 0 : index
    %26 = memref.load %arg3[%c0_8] : memref<1xf32, #tpu.memory_space<smem>>
    memref.store %25, %arg3[%c0_8] : memref<1xf32, #tpu.memory_space<smem>>
    %c0_i32_9 = arith.constant 0 : i32
    %27 = arith.cmpi eq, %arg0, %c0_i32_9 : i32
    %28 = arith.extui %27 : i1 to i32
    %c0_i32_10 = arith.constant 0 : i32
    %29 = arith.cmpi ne, %28, %c0_i32_10 : i32
    scf.if %29 {
      %c0_11 = arith.constant 0 : index
      %30 = memref.load %arg3[%c0_11] : memref<1xf32, #tpu.memory_space<smem>>
      %c0_12 = arith.constant 0 : index
      %c0_13 = arith.constant 0 : index
      %31 = memref.load %arg2[%c0_12, %c0_13] : memref<1x1xf32, #tpu.memory_space<smem>>
      memref.store %30, %arg2[%c0_12, %c0_13] : memref<1x1xf32, #tpu.memory_space<smem>>
    } else {
    }
    return
  }
  func.func @transform_0(%arg0: i32) -> (i32, i32) {
    %c0_i32 = arith.constant 0 : i32
    %c0_i32_0 = arith.constant 0 : i32
    return %arg0, %c0_i32 : i32, i32
  }
  func.func @transform_1(%arg0: i32) -> (i32, i32) {
    %c0_i32 = arith.constant 0 : i32
    %c0_i32_0 = arith.constant 0 : i32
    %c0_i32_1 = arith.constant 0 : i32
    return %c0_i32, %c0_i32_0 : i32, i32
  }
}

</mosaic_0001>

<bundles_post_ra>
// kernel: tpu_custom_call.1
= control target key start
LH: loop header
LB: loop body
LE: loop exit
PB: predicated region body
PF: predicated region fallthrough
CT: control target
= control target key end

     0   :  { %vm31_vm0 = vcmask 261120   ;;  %s442_s0 = inlined_call_operand.vmem [shape: f32[64,32], index: 0, kind: input, shape index: {}]   ;;  %s443_s1 = inlined_call_operand.hbm [shape: f32[1,1], index: 1, kind: output, shape index: {}]  }
   0x1   :  { %v19_v0 = vld [vmem:[%s442_s0 + $0x20] sm:$0xff]  ;;  %v17_v1 = vld [vmem:[%s442_s0 + $0x10] sm:$0xff]  ;;  %v20_v6 = vld [vmem:[%s442_s0 + $0x28] sm:$0xff] }
   0x2   :  { %v15_v2 = vld [vmem:[%s442_s0] sm:$0xff]  ;;  %v27_v3 = vmul.f32 %v19_v0, %v19_v0  ;;  %v25_v4 = vmul.f32 %v17_v1, %v17_v1  ;;  %v18_v7 = vld [vmem:[%s442_s0 + $0x18] sm:$0xff] }
   0x3   :  { %v23_v5 = vmul.f32 %v15_v2, %v15_v2 }
   0x4   :  { %6 = vsyncpa [#allocation4], 0  ;;  %v44_v8 = vsel %vm31_vm0, %v27_v3, 0.0  ;;  %v38_v9 = vsel %vm31_vm0, %v25_v4, 0.0  ;;  %v16_v11 = vld [vmem:[%s442_s0 + $0x8] sm:$0xff]  ;;  %v28_v12 = vmul.f32 %v20_v6, %v20_v6  ;;  %v26_v13 = vmul.f32 %v18_v7, %v18_v7  ;;  %v22_v18 = vld [vmem:[%s442_s0 + $0x38] sm:$0xff] }
   0x5   :  { %v32_v10 = vsel %vm31_vm0, %v23_v5, 0.0  ;;  %45 = vadd.xlane.f32.xlu2 %v44_v8  ;;  %39 = vadd.xlane.f32.xlu1 %v38_v9  ;;  %v24_v14 = vmul.f32 %v16_v11, %v16_v11  ;;  %v21_v19 = vld [vmem:[%s442_s0 + $0x30] sm:$0xff]  ;;  %v30_v20 = vmul.f32 %v22_v18, %v22_v18  ;;  %vm204_vm13 = vcmask 7168   ;;  %s243_s23 = sshll.u32 %s443_s1, 4  ;;  %s294_s25 = smov [#allocation3]   ;;  %s244_s23 = int_to_ptr.hbm [resolvable:$true] %s243_s23 }
   0x6   :  { %33 = vadd.xlane.f32.xlu0 %v32_v10  ;;  %v47_v15 = vsel %vm31_vm0, %v28_v12, 0.0  ;;  %v41_v16 = vsel %vm31_vm0, %v26_v13, 0.0  ;;  %v29_v21 = vmul.f32 %v21_v19, %v21_v19 }
   0x7   :  { %v35_v17 = vsel %vm31_vm0, %v24_v14, 0.0  ;;  %v53_v22 = vsel %vm31_vm0, %v30_v20, 0.0 }
   0x8   :  { %v50_v23 = vsel %vm31_vm0, %v29_v21, 0.0 }
   0xd   :  { %48 = vadd.xlane.f32.xlu2 %v47_v15  ;;  %42 = vadd.xlane.f32.xlu1 %v41_v16 }
   0xe   :  { %36 = vadd.xlane.f32.xlu0 %v35_v17 }
  0x15   :  { %54 = vadd.xlane.f32.xlu1 %v53_v22 }
  0x16   :  { %51 = vadd.xlane.f32.xlu0 %v50_v23 }
  0x78   :  { %v337_v24 = vpop.xlane.xlu2 %45  ;;  %v339_v25 = vpop.xlane.xlu1 %39 }
  0x79   :  { %264 = vrsqrt.f32 %v337_v24  ;;  %v342_v26 = vpop.xlane.xlu0 %33  ;;  %v114_v44 = vand.u32 2147483648, %v337_v24  ;;  %vm87_vm1 = vcmp.eq.f32.partialorder %v339_v25, inf  ;;  %vm111_vm2 = vcmp.eq.f32.partialorder %v337_v24, inf }
  0x7a   :  { %266 = vrsqrt.f32 %v339_v25  ;;  %vm89_vm3 = vcmp.eq.f32.partialorder %v339_v25, 0.0  ;;  %v90_v47 = vand.u32 2147483648, %v339_v25  ;;  %vm63_vm4 = vcmp.eq.f32.partialorder %v342_v26, inf }
  0x7b   :  { %268 = vrsqrt.f32 %v342_v26  ;;  %vm65_vm5 = vcmp.eq.f32.partialorder %v342_v26, 0.0  ;;  %v66_v60 = vand.u32 2147483648, %v342_v26  ;;  %vm113_vm6 = vcmp.eq.f32.partialorder %v337_v24, 0.0 }
  0x7f   :  { %v265_v27 = vpop.eup %264 }
  0x80   :  { %v267_v28 = vpop.eup %266  ;;  %v105_v29 = vmul.f32 %v265_v27, %v337_v24  ;;  %v347_v30 = vpop.xlane.xlu2 %48 }
  0x81   :  { %v349_v31 = vpop.xlane.xlu1 %42  ;;  %v269_v32 = vpop.eup %268  ;;  %v81_v33 = vmul.f32 %v267_v28, %v339_v25  ;;  %270 = vrsqrt.f32 %v347_v30  ;;  %vm123_vm11 = vcmp.eq.f32.partialorder %v347_v30, inf  ;;  %vm125_vm12 = vcmp.eq.f32.partialorder %v347_v30, 0.0 }
  0x82   :  { %v353_v34 = vpop.xlane.xlu0 %36  ;;  %v106_v35 = vmul.f32 %v265_v27, %v105_v29  ;;  %v57_v36 = vmul.f32 %v269_v32, %v342_v26  ;;  %272 = vrsqrt.f32 %v349_v31  ;;  %vm99_vm7 = vcmp.eq.f32.partialorder %v349_v31, inf }
  0x83   :  { %v82_v37 = vmul.f32 %v267_v28, %v81_v33  ;;  %274 = vrsqrt.f32 %v353_v34  ;;  %v102_v3 = vand.u32 2147483648, %v349_v31  ;;  %vm75_vm8 = vcmp.eq.f32.partialorder %v353_v34, inf }
  0x84   :  { %v107_v38 = vmul.f32 0.5, %v106_v35  ;;  %v58_v39 = vmul.f32 %v269_v32, %v57_v36  ;;  %vm77_vm9 = vcmp.eq.f32.partialorder %v353_v34, 0.0  ;;  %v78_v10 = vand.u32 2147483648, %v353_v34 }
  0x85   :  { %v83_v40 = vmul.f32 0.5, %v82_v37  ;;  %vm101_vm10 = vcmp.eq.f32.partialorder %v349_v31, 0.0  ;;  %v126_v35 = vand.u32 2147483648, %v347_v30 }
  0x86   :  { %v108_v41 = vsub.f32 1.5, %v107_v38  ;;  %v59_v42 = vmul.f32 0.5, %v58_v39 }
  0x87   :  { %v271_v43 = vpop.eup %270  ;;  %v84_v45 = vsub.f32 1.5, %v83_v40 }
  0x88   :  { %v273_v46 = vpop.eup %272  ;;  %v60_v48 = vsub.f32 1.5, %v59_v42  ;;  %v117_v49 = vmul.f32 %v271_v43, %v347_v30  ;;  %v109_v52 = vmul.f32 %v265_v27, %v108_v41 }
  0x89   :  { %v365_v50 = vpop.xlane.xlu1 %54  ;;  %v275_v51 = vpop.eup %274  ;;  %v85_v53 = vmul.f32 %v267_v28, %v84_v45  ;;  %v93_v54 = vmul.f32 %v273_v46, %v349_v31 }
  0x8a   :  { %276 = vrsqrt.f32 %v365_v50  ;;  %v369_v55 = vpop.xlane.xlu0 %51  ;;  %v61_v56 = vmul.f32 %v269_v32, %v60_v48  ;;  %v118_v57 = vmul.f32 %v271_v43, %v117_v49  ;;  %v69_v58 = vmul.f32 %v275_v51, %v353_v34 }
  0x8b   :  { %v86_v59 = vmul.f32 %v85_v53, %v339_v25  ;;  %v94_v61 = vmul.f32 %v273_v46, %v93_v54  ;;  %278 = vrsqrt.f32 %v369_v55  ;;  %v110_v1 = vmul.f32 %v109_v52, %v337_v24 }
  0x8c   :  { %v62_v62 = vmul.f32 %v61_v56, %v342_v26  ;;  %v119_v63 = vmul.f32 0.5, %v118_v57  ;;  %v70_v0 = vmul.f32 %v275_v51, %v69_v58  ;;  %vm147_vm14 = vcmp.eq.f32.partialorder %v365_v50, inf }
  0x8d   :  { %v95_v2 = vmul.f32 0.5, %v94_v61  ;;  %v88_v4 = vsel %vm87_vm1, %v339_v25, %v86_v59  ;;  %v112_v18 = vsel %vm111_vm2, %v337_v24, %v110_v1  ;;  %vm149_vm15 = vcmp.eq.f32.partialorder %v365_v50, 0.0 }
  0x8e   :  { %v64_v5 = vsel %vm63_vm4, %v342_v26, %v62_v62  ;;  %v120_v6 = vsub.f32 1.5, %v119_v63  ;;  %v71_v7 = vmul.f32 0.5, %v70_v0  ;;  %v91_v17 = vsel %vm89_vm3, %v90_v47, %v88_v4 }
  0x8f   :  { %v96_v9 = vsub.f32 1.5, %v95_v2  ;;  %v67_v14 = vsel %vm65_vm5, %v66_v60, %v64_v5  ;;  %v115_v33 = vsel %vm113_vm6, %v114_v44, %v112_v18  ;;  %v255_v36 = vadd.f32 -1.0, %v91_v17 }
  0x90   :  { %v277_v8 = vpop.eup %276  ;;  %v121_v11 = vmul.f32 %v271_v43, %v120_v6  ;;  %v72_v12 = vsub.f32 1.5, %v71_v7  ;;  %v253_v25 = vadd.f32 -1.0, %v67_v14  ;;  %vm135_vm0 = vcmp.eq.f32.partialorder %v369_v55, inf }
  0x91   :  { %v141_v13 = vmul.f32 %v277_v8, %v365_v50  ;;  %v279_v15 = vpop.eup %278  ;;  %v97_v16 = vmul.f32 %v273_v46, %v96_v9  ;;  %v257_v46 = vadd.f32 -1.0, %v115_v33  ;;  %v138_v58 = vand.u32 2147483648, %v369_v55 }
  0x92   :  { %v122_v19 = vmul.f32 %v121_v11, %v347_v30  ;;  %v73_v20 = vmul.f32 %v275_v51, %v72_v12  ;;  %v129_v22 = vmul.f32 %v279_v15, %v369_v55  ;;  %v160_v43 = vmax.f32 %v253_v25, 0.0 }
  0x93   :  { %v142_v21 = vmul.f32 %v277_v8, %v141_v13  ;;  %v98_v23 = vmul.f32 %v97_v16, %v349_v31  ;;  %v162_v51 = vmax.f32 %v255_v36, 0.0  ;;  %vm137_vm1 = vcmp.eq.f32.partialorder %v369_v55, 0.0 }
  0x94   :  { %v74_v26 = vmul.f32 %v73_v20, %v353_v34  ;;  %v130_v28 = vmul.f32 %v279_v15, %v129_v22  ;;  %v124_v29 = vsel %vm123_vm11, %v347_v30, %v122_v19  ;;  %v205_v52 = vsel %vm204_vm13, %v160_v43, 0.0 }
  0x95   :  { %v143_v27 = vmul.f32 0.5, %v142_v21  ;;  %v100_v32 = vsel %vm99_vm7, %v349_v31, %v98_v23  ;;  %v127_v42 = vsel %vm125_vm12, %v126_v35, %v124_v29  ;;  %v150_v31 = vand.u32 2147483648, %v365_v50 }
  0x96   :  { %v76_v37 = vsel %vm75_vm8, %v353_v34, %v74_v26  ;;  %v131_v39 = vmul.f32 0.5, %v130_v28  ;;  %v103_v40 = vsel %vm101_vm10, %v102_v3, %v100_v32  ;;  %v258_v34 = vadd.f32 -1.0, %v127_v42 }
  0x97   :  { %v144_v38 = vsub.f32 1.5, %v143_v27  ;;  %v79_v41 = vsel %vm77_vm9, %v78_v10, %v76_v37  ;;  %v256_v30 = vadd.f32 -1.0, %v103_v40  ;;  %v164_v62 = vmax.f32 %v257_v46, 0.0 }
  0x98   :  { %v132_v44 = vsub.f32 1.5, %v131_v39  ;;  %v254_v45 = vadd.f32 -1.0, %v79_v41  ;;  %v208_v63 = vsel %vm204_vm13, %v162_v51, 0.0  ;;  %v165_v3 = vmax.f32 %v258_v34, 0.0 }
  0x99   :  { %v145_v24 = vmul.f32 %v277_v8, %v144_v38  ;;  %v163_v56 = vmax.f32 %v256_v30, 0.0  ;;  %v212_v7 = vsel %vm204_vm13, %v164_v62, 0.0 }
  0x9a   :  { %v133_v48 = vmul.f32 %v279_v15, %v132_v44  ;;  %v161_v49 = vmax.f32 %v254_v45, 0.0  ;;  %v214_v10 = vsel %vm204_vm13, %v165_v3, 0.0 }
  0x9b   :  { %v146_v47 = vmul.f32 %v145_v24, %v365_v50  ;;  %v210_v4 = vsel %vm204_vm13, %v163_v56, 0.0 }
  0x9c   :  { %v134_v53 = vmul.f32 %v133_v48, %v369_v55  ;;  %v206_v57 = vsel %vm204_vm13, %v161_v49, 0.0 }
  0x9d   :  { %v148_v54 = vsel %vm147_vm14, %v365_v50, %v146_v47  ;;  %v207_v60 = vadd.f32 %v206_v57, %v205_v52 }
  0x9e   :  { %v151_v59 = vsel %vm149_vm15, %v150_v31, %v148_v54  ;;  %v136_v61 = vsel %vm135_vm0, %v369_v55, %v134_v53 }
  0x9f   :  { %v139_v0 = vsel %vm137_vm1, %v138_v58, %v136_v61  ;;  %v209_v1 = vadd.f32 %v208_v63, %v207_v60  ;;  %v260_v50 = vadd.f32 -1.0, %v151_v59 }
  0xa0   :  { %v259_v2 = vadd.f32 -1.0, %v139_v0 }
  0xa1   :  { %v211_v5 = vadd.f32 %v210_v4, %v209_v1  ;;  %v167_v9 = vmax.f32 %v260_v50, 0.0 }
  0xa2   :  { %v166_v6 = vmax.f32 %v259_v2, 0.0 }
  0xa3   :  { %v213_v8 = vadd.f32 %v212_v7, %v211_v5  ;;  %v218_v13 = vsel %vm204_vm13, %v167_v9, 0.0 }
  0xa4   :  { %v216_v55 = vsel %vm204_vm13, %v166_v6, 0.0 }
  0xa5   :  { %v215_v11 = vadd.f32 %v214_v10, %v213_v8 }
  0xa7   :  { %v217_v12 = vadd.f32 %v216_v55, %v215_v11 }
  0xa9   :  { %v219_v14 = vadd.f32 %v218_v13, %v217_v12 }
  0xab   :  { %220 = vadd.xlane.f32.xlu2 %v219_v14 }
 0x11e   :  { %v221_v15 = vpop.xlane.xlu2 %220 }
 0x11f   :  { %v222_v16 = vrot.slane %v221_v15, 4 }
 0x121   :  { %v223_v17 = vadd.f32 %v222_v16, %v221_v15 }
 0x123   :  { %v224_v18 = vrot.slane %v223_v17, 2 }
 0x125   :  { %v225_v19 = vadd.f32 %v224_v18, %v223_v17 }
 0x127   :  { %v226_v20 = vrot.slane %v225_v19, 1 }
 0x129   :  { %v227_v21 = vadd.f32 %v226_v20, %v225_v19 }
 0x12b   :  { %261 = vpush %v227_v21 }
 0x15c   :  { %s262_s24 = spop %261 }
 0x15d   :  { %237 = sst [smem:[#allocation3]] %s262_s24 }
 0x15e   :  { %246 = dma.smem_to_hbm %s294_s25, 16, %s244_s23, [#allocation4]  }
 0x15f   :  { %292 = dma.done.wait [#allocation4], 16  }
 0x160   :  { %293 = vsyncadd [#allocation4], 4294967280 }
 0x161   :  { %251 = sfence }
 0x162   :  { %252 = vsyncpa [#allocation4], 1 }

</bundles_post_ra>
